<compile_context>
chip_gen: v7x
topology: tpu7x:2x2x1
jax: 0.10.0
libtpu: 0.0.40
codegen_flags: <defaults>
</compile_context>

<pallas_src>
import jax
import jax.numpy as jnp
from jax.experimental import pallas as pl
from jax.experimental.pallas import tpu as pltpu

_SUBLANE = 8
_LANE = 128


def _identity_kernel(x_ref, o_ref):
    # Full-tile, unmasked vector copy; no arithmetic, casts, or slicing.
    o_ref[...] = x_ref[...]


def no_operation(x):
    """NoOperation.forward(x) -> x.  Optimal implementation: no kernel at all."""
    return x


def _lane_dense_2d_shape(shape, total):
    """Pick a (rows, cols) reshape whose last dim is a large multiple of 128."""
    for cols in (4096, 2048, 1024, 512, 256, _LANE):
        if total % cols == 0:
            return total // cols, cols
    # Fall back to the original trailing dim (may imply masked partial stores).
    cols = shape[-1] if len(shape) >= 2 else total
    return total // cols, cols


@jax.jit
def no_operation_pallas(x):
    """Identity materialized as a Pallas copy, for when an explicit kernel is required."""
    orig_shape = x.shape
    total = x.size
    rows, cols = _lane_dense_2d_shape(orig_shape, total)
    x2d = x.reshape(rows, cols)
    itemsize = jnp.dtype(x2d.dtype).itemsize

    # Row-tile: multiple of 8, capped so each buffer is <= ~4 MiB.  With
    # double-buffered input + output that is <= ~16 MiB of VMEM, safe on v7x.
    bytes_per_row = max(cols * itemsize, 1)
    max_rows = max(_SUBLANE, (4 * 1024 * 1024) // bytes_per_row)
    if max_rows >= rows:
        tm = rows  # single full-extent block (small input) -> no (8,128) issue
    else:
        tm = max(_SUBLANE, (max_rows // _SUBLANE) * _SUBLANE)
    grid = (pl.cdiv(rows, tm),)

    out = pl.pallas_call(
        _identity_kernel,
        out_shape=jax.ShapeDtypeStruct((rows, cols), x2d.dtype),
        grid_spec=pl.GridSpec(
            grid=grid,
            in_specs=[pl.BlockSpec((tm, cols), lambda i: (i, 0))],
            out_specs=pl.BlockSpec((tm, cols), lambda i: (i, 0)),
        ),
        # Alias input buffer 0 into output 0: halves HBM allocation pressure.
        input_output_aliases={0: 0},
        compiler_params=pltpu.CompilerParams(
            dimension_semantics=("parallel",),  # shard row-tiles across TCs (v7x)
            vmem_limit_bytes=32 * 1024 * 1024,
        ),
        cost_estimate=pl.CostEstimate(
            flops=0,
            transcendentals=0,
            bytes_accessed=2 * total * itemsize,
        ),
    )(x2d)

    return out.reshape(orig_shape)


if __name__ == "__main__":
    key = jax.random.PRNGKey(0)
    # NCHW input, consistent with typical conv-module usage in mlsnet.
    x = jax.random.normal(key, (2, 4, 16, 16), dtype=jnp.float32)

    # Optimal path: identity is free (no kernel launched).
    y_fast = no_operation(x)
    assert y_fast.shape == x.shape and bool(jnp.array_equal(y_fast, x))

    # Pallas kernel path (lane-dense, tiled, aliased copy).
    y = no_operation_pallas(x)
    jax.block_until_ready(y)

    assert y.shape == x.shape and y.dtype == x.dtype
    assert bool(jnp.array_equal(y, x))
    print("KERNEL_OK")
</pallas_src>

<mosaic_0001>
module attributes {stable_mosaic.version = 11 : i64} {
  func.func @_identity_kernel(%arg0: i32, %arg1: memref<1x2048xf32, #tpu.memory_space<vmem>>, %arg2: memref<1x2048xf32, #tpu.memory_space<vmem>>) attributes {dimension_semantics = [#tpu.dimension_semantics<parallel>], iteration_bounds = array<i64: 1>, scalar_prefetch = 0 : i64, scratch_operands = 0 : i64, tpu.core_type = #tpu.core_type<tc>, window_params = [{transform_indices = @transform_0, window_bounds = array<i64: 1, 2048>}, {transform_indices = @transform_1, window_bounds = array<i64: 1, 2048>}]} {
    %c0 = arith.constant 0 : index
    %c0_0 = arith.constant 0 : index
    %0 = vector.load %arg1[%c0, %c0_0] : memref<1x2048xf32, #tpu.memory_space<vmem>>, vector<1x2048xf32>
    %c0_1 = arith.constant 0 : index
    %c0_2 = arith.constant 0 : index
    %1 = vector.load %arg2[%c0_1, %c0_2] : memref<1x2048xf32, #tpu.memory_space<vmem>>, vector<1x2048xf32>
    tpu.vector_store %arg2[%c0_1, %c0_2], %0 {strides = array<i32>} : memref<1x2048xf32, #tpu.memory_space<vmem>>, vector<1x2048xf32>,
    return
  }
  func.func @transform_0(%arg0: i32) -> (i32, i32) {
    %c0_i32 = arith.constant 0 : i32
    %c0_i32_0 = arith.constant 0 : i32
    return %arg0, %c0_i32 : i32, i32
  }
  func.func @transform_1(%arg0: i32) -> (i32, i32) {
    %c0_i32 = arith.constant 0 : i32
    %c0_i32_0 = arith.constant 0 : i32
    return %arg0, %c0_i32 : i32, i32
  }
}

</mosaic_0001>

<bundles_post_ra>
// kernel: no_operation_pallas.1
= control target key start
LH: loop header
LB: loop body
LE: loop exit
PB: predicated region body
PF: predicated region fallthrough
CT: control target
= control target key end

     0   :  { %s38_s0 = inlined_call_operand.vmem [shape: f32[1,2048], index: 0, kind: input, shape index: {}, may-alias: {0,1}]   ;;  %s39_s1 = inlined_call_operand.vmem [shape: f32[1,2048], index: 1, kind: output, shape index: {}, may-alias: {0,1}]  }
   0x1   :  { %v8_v0 = vld [vmem:[%s38_s0] sm:$0xff]  ;;  %v9_v1 = vld [vmem:[%s38_s0 + $0x8] sm:$0xff] }
   0x2   :  { %10 = vst [vmem:[%s39_s1] sm:$0xff] %v8_v0  ;;  %11 = vst [vmem:[%s39_s1 + $0x8] sm:$0xff] %v9_v1 }

</bundles_post_ra>
